<compile_context>
chip_gen: v5e
topology: v5e:2x2
jax: 0.10.0
libtpu: 0.0.40
codegen_flags: <defaults>
</compile_context>

<pallas_src>
import jax
import jax.numpy as jnp
from jax.experimental import pallas as pl
from jax.experimental.pallas import tpu as pltpu


_SUBLANE = 8
_LANE = 128
# Double-buffered (input + output) tile budget; sized to fit comfortably under
# v7x's 64 MiB physical / 32 MiB default-scoped VMEM.  v5e/v6e have headroom.
_TILE_VMEM_BUDGET = 20 * 1024 * 1024
_VMEM_LIMIT = 32 * 1024 * 1024


def _pad(n, m):
    return -(-n // m) * m


def _choose_c_tile(C, B, ratio, bs, itemsize):
    """Largest divisor of C whose double-buffered in+out tile fits the budget.

    VMEM accounting includes (8, 128) sublane/lane padding of the last two
    dims (a bs=16 block occupies 128 lanes in VMEM, 8x its nominal bytes).
    """
    W = ratio * bs
    in_per_c = ratio * ratio * _pad(bs, _SUBLANE) * _pad(bs, _LANE) * itemsize
    out_per_c = _pad(W, _SUBLANE) * _pad(W, _LANE) * itemsize
    per_c = 2 * (in_per_c + out_per_c)          # x2: default double buffering
    max_tc = max(1, _TILE_VMEM_BUDGET // per_c)

    tc = 1
    for d in range(1, C + 1):
        if C % d == 0 and d <= max_tc:
            tc = d

    # v7x has 2 TensorCores; if the batch axis alone cannot provide >= 2
    # parallel grid steps, split the C axis so both cores get work.
    if B == 1 and tc == C and C > 1:
        for d in range(C // 2, 0, -1):
            if C % d == 0:
                tc = d
                break
    return tc


def _make_recover_kernel(ratio, bs):
    def kernel(x_ref, o_ref):
        # x_ref: (ratio, ratio, TC, bs, bs)  axes = (bc, br, c, r, col)
        # o_ref: (TC, W, W)                  full-width output slab of one
        #                                    (batch, C-tile) step
        if bs % _LANE == 0:
            # Lane-aligned blocks: direct, unmasked slice-stores; no
            # intermediate value to spill.
            for br in range(ratio):                      # static unroll
                for bc in range(ratio):
                    o_ref[:, br * bs:(br + 1) * bs,
                          bc * bs:(bc + 1) * bs] = x_ref[bc, br]
        else:
            # Unaligned bs: assemble one lane-dense row slab per br on the
            # idle XLU/VPU and issue a single full-width store, instead of
            # `ratio` masked lane-sparse stores.
            for br in range(ratio):                      # static unroll
                row = jnp.concatenate(
                    [x_ref[bc, br] for bc in range(ratio)], axis=-1)
                o_ref[:, br * bs:(br + 1) * bs, :] = row

    return kernel


def recover2d(x, ratio):
    """x: (B*ratio**2, C, bs, bs)  ->  (B, C, ratio*bs, ratio*bs)."""
    total, C, bs, bs2 = x.shape
    assert bs == bs2, "blocks must be square"
    block_num = ratio * ratio
    assert total % block_num == 0, "leading dim must be batch * ratio**2"
    B = total // block_num
    W = ratio * bs
    itemsize = jnp.dtype(x.dtype).itemsize

    # Pure view (no data movement): split leading dim into (b, bc, br),
    # since bi = bc*ratio + br.
    x6 = x.reshape(B, ratio, ratio, C, bs, bs)

    tc = _choose_c_tile(C, B, ratio, bs, itemsize)
    n_ct = C // tc

    kernel = _make_recover_kernel(ratio, bs)

    out = pl.pallas_call(
        kernel,
        out_shape=jax.ShapeDtypeStruct((B, C, W, W), x.dtype),
        grid=(B, n_ct),
        in_specs=[pl.BlockSpec(
            # whole row/col block grid for one (b, C-tile): contiguous read
            # when tc == C, otherwise ratio**2 contiguous runs of tc*bs*bs
            (None, ratio, ratio, tc, bs, bs),
            lambda b, ci: (b, 0, 0, ci, 0, 0))],
        out_specs=pl.BlockSpec(
            # contiguous, full-width (lane-dense for W >= 128) output slab
            (None, tc, W, W),
            lambda b, ci: (b, ci, 0, 0)),
        compiler_params=pltpu.CompilerParams(
            dimension_semantics=("parallel", "parallel"),
            vmem_limit_bytes=_VMEM_LIMIT),
        cost_estimate=pl.CostEstimate(
            flops=0,
            transcendentals=0,
            bytes_accessed=2 * x.size * itemsize),
    )(x6)
    return out


def recover2d_ref(x, ratio):
    """Pure-JAX transliteration of the PyTorch tensor_recover_2d."""
    total, C, bs, _ = x.shape
    block_num = ratio * ratio
    B = total // block_num
    y = x.reshape(B, block_num, C, bs, bs)
    y = jnp.swapaxes(y, 1, 2)                                      # (B,C,bn,bs,bs)
    y = jnp.concatenate(jnp.split(y, block_num, axis=2), axis=3)   # (B,C,1,bn*bs,bs)
    y = jnp.squeeze(y, axis=2)                                     # (B,C,bn*bs,bs)
    y = jnp.concatenate(jnp.split(y, ratio, axis=2), axis=3)       # (B,C,r*bs,r*bs)
    return y


if __name__ == "__main__":
    key = jax.random.PRNGKey(0)

    # Primary small config (unaligned-bs path): (B*ratio**2, C, bs, bs) = (8,4,16,16)
    ratio, B, C, bs = 2, 2, 4, 16
    x = jax.random.normal(key, (B * ratio * ratio, C, bs, bs), jnp.float32)
    out = jax.block_until_ready(recover2d(x, ratio))
    ref = recover2d_ref(x, ratio)
    assert out.shape == (B, C, ratio * bs, ratio * bs)
    assert jnp.array_equal(out, ref), "mismatch vs reference (bs=16 path)"

    # Lane-aligned config (bs % 128 == 0 path, B == 1 exercises the C split).
    ratio2, B2, C2, bs2 = 2, 1, 4, 128
    x2 = jax.random.normal(key, (B2 * ratio2 * ratio2, C2, bs2, bs2), jnp.float32)
    out2 = jax.block_until_ready(recover2d(x2, ratio2))
    assert jnp.array_equal(out2, recover2d_ref(x2, ratio2)), \
        "mismatch vs reference (bs=128 path)"

    print("KERNEL_OK")
</pallas_src>

<mosaic_0001>
module attributes {stable_mosaic.version = 11 : i64} {
  func.func @kernel(%arg0: i32, %arg1: i32, %arg2: memref<1x2x2x4x16x16xf32, #tpu.memory_space<vmem>>, %arg3: memref<1x4x32x32xf32, #tpu.memory_space<vmem>>) attributes {dimension_semantics = [#tpu.dimension_semantics<parallel>, #tpu.dimension_semantics<parallel>], iteration_bounds = array<i64: 2, 1>, scalar_prefetch = 0 : i64, scratch_operands = 0 : i64, tpu.core_type = #tpu.core_type<tc>, window_params = [{transform_indices = @transform_0, window_bounds = array<i64: 1, 2, 2, 4, 16, 16>}, {transform_indices = @transform_1, window_bounds = array<i64: 1, 4, 32, 32>}]} {
    %c0 = arith.constant 0 : index
    %c0_0 = arith.constant 0 : index
    %c0_1 = arith.constant 0 : index
    %c0_2 = arith.constant 0 : index
    %c0_3 = arith.constant 0 : index
    %c0_4 = arith.constant 0 : index
    %0 = vector.load %arg2[%c0, %c0_0, %c0_1, %c0_2, %c0_3, %c0_4] : memref<1x2x2x4x16x16xf32, #tpu.memory_space<vmem>>, vector<1x1x1x4x16x16xf32>
    %1 = vector.shape_cast %0 : vector<1x1x1x4x16x16xf32> to vector<4x16x16xf32>
    %c0_5 = arith.constant 0 : index
    %c1 = arith.constant 1 : index
    %c0_6 = arith.constant 0 : index
    %c0_7 = arith.constant 0 : index
    %c0_8 = arith.constant 0 : index
    %c0_9 = arith.constant 0 : index
    %2 = vector.load %arg2[%c0_5, %c1, %c0_6, %c0_7, %c0_8, %c0_9] : memref<1x2x2x4x16x16xf32, #tpu.memory_space<vmem>>, vector<1x1x1x4x16x16xf32>
    %3 = vector.shape_cast %2 : vector<1x1x1x4x16x16xf32> to vector<4x16x16xf32>
    %4 = tpu.concatenate %1, %3 in 2 : vector<4x16x16xf32>, vector<4x16x16xf32> -> vector<4x16x32xf32>
    %c0_10 = arith.constant 0 : index
    %c0_11 = arith.constant 0 : index
    %c0_12 = arith.constant 0 : index
    %c0_13 = arith.constant 0 : index
    %5 = vector.load %arg3[%c0_10, %c0_11, %c0_12, %c0_13] : memref<1x4x32x32xf32, #tpu.memory_space<vmem>>, vector<1x4x16x32xf32>
    %6 = vector.shape_cast %5 : vector<1x4x16x32xf32> to vector<4x16x32xf32>
    %7 = vector.shape_cast %4 : vector<4x16x32xf32> to vector<1x4x16x32xf32>
    tpu.vector_store %arg3[%c0_10, %c0_11, %c0_12, %c0_13], %7 {strides = array<i32>} : memref<1x4x32x32xf32, #tpu.memory_space<vmem>>, vector<1x4x16x32xf32>,
    %c0_14 = arith.constant 0 : index
    %c0_15 = arith.constant 0 : index
    %c1_16 = arith.constant 1 : index
    %c0_17 = arith.constant 0 : index
    %c0_18 = arith.constant 0 : index
    %c0_19 = arith.constant 0 : index
    %8 = vector.load %arg2[%c0_14, %c0_15, %c1_16, %c0_17, %c0_18, %c0_19] : memref<1x2x2x4x16x16xf32, #tpu.memory_space<vmem>>, vector<1x1x1x4x16x16xf32>
    %9 = vector.shape_cast %8 : vector<1x1x1x4x16x16xf32> to vector<4x16x16xf32>
    %c0_20 = arith.constant 0 : index
    %c1_21 = arith.constant 1 : index
    %c1_22 = arith.constant 1 : index
    %c0_23 = arith.constant 0 : index
    %c0_24 = arith.constant 0 : index
    %c0_25 = arith.constant 0 : index
    %10 = vector.load %arg2[%c0_20, %c1_21, %c1_22, %c0_23, %c0_24, %c0_25] : memref<1x2x2x4x16x16xf32, #tpu.memory_space<vmem>>, vector<1x1x1x4x16x16xf32>
    %11 = vector.shape_cast %10 : vector<1x1x1x4x16x16xf32> to vector<4x16x16xf32>
    %12 = tpu.concatenate %9, %11 in 2 : vector<4x16x16xf32>, vector<4x16x16xf32> -> vector<4x16x32xf32>
    %c0_26 = arith.constant 0 : index
    %c0_27 = arith.constant 0 : index
    %c16 = arith.constant 16 : index
    %c0_28 = arith.constant 0 : index
    %13 = vector.load %arg3[%c0_26, %c0_27, %c16, %c0_28] : memref<1x4x32x32xf32, #tpu.memory_space<vmem>>, vector<1x4x16x32xf32>
    %14 = vector.shape_cast %13 : vector<1x4x16x32xf32> to vector<4x16x32xf32>
    %15 = vector.shape_cast %12 : vector<4x16x32xf32> to vector<1x4x16x32xf32>
    tpu.vector_store %arg3[%c0_26, %c0_27, %c16, %c0_28], %15 {strides = array<i32>} : memref<1x4x32x32xf32, #tpu.memory_space<vmem>>, vector<1x4x16x32xf32>,
    return
  }
  func.func @transform_0(%arg0: i32, %arg1: i32) -> (i32, i32, i32, i32, i32, i32) {
    %c0_i32 = arith.constant 0 : i32
    %c0_i32_0 = arith.constant 0 : i32
    %c0_i32_1 = arith.constant 0 : i32
    %c0_i32_2 = arith.constant 0 : i32
    %c0_i32_3 = arith.constant 0 : i32
    return %arg0, %c0_i32, %c0_i32_0, %arg1, %c0_i32_1, %c0_i32_2 : i32, i32, i32, i32, i32, i32
  }
  func.func @transform_1(%arg0: i32, %arg1: i32) -> (i32, i32, i32, i32) {
    %c0_i32 = arith.constant 0 : i32
    %c0_i32_0 = arith.constant 0 : i32
    %c0_i32_1 = arith.constant 0 : i32
    return %arg0, %arg1, %c0_i32, %c0_i32_0 : i32, i32, i32, i32
  }
}

</mosaic_0001>

<bundles_post_ra>
// kernel: tpu_custom_call.1
= control target key start
LH: loop header
LB: loop body
LE: loop exit
PB: predicated region body
PF: predicated region fallthrough
CT: control target
= control target key end

     0   :  { %6 = vsyncpa [#allocation3], 0  ;;  %s856_s0 = inlined_call_operand.hbm [shape: f32[2,2,2,4,16,16], index: 0, kind: input, shape index: {}]   ;;  %s857_s1 = inlined_call_operand.hbm [shape: f32[2,4,32,32], index: 1, kind: output, shape index: {}]  }
   0x1   :  { %8 = vsyncpa [#allocation3 + $0x1], 0 }
   0x2   :  { %9 = vsyncpa [#allocation4], 0 }
   0x3   :  { %11 = vsyncpa [#allocation4 + $0x1], 0  ;;  %s634_s6 = smov 0   ;;  %s636_s7 = smov 0  }
   0x4   :  { %s638_s8 = smov 0   ;;  %s640_s9 = smov 0  }
   0x5   :  { %s642_s10 = smov 0   ;;  %s644_s11 = smov 0  }
   0x6 LB: > { %s397_s12 = sadd.s32 4294967295, %s617_s11   ;;  %s398_s13 = sadd.s32 4294967294, %s617_s11   ;;  %s617_s11 = sphi %s644_s11, %s17_s11   ;;  %s613_s10 = sphi %s642_s10, %s866_s10   ;;  %s609_s9 = sphi %s640_s9, %s865_s9   ;;  %s605_s8 = sphi %s638_s8, %s864_s8   ;;  %s601_s7 = sphi %s636_s7, %s863_s7   ;;  %s597_s6 = sphi %s634_s6, %s862_s6  }
   0x7   : > { %s29_s14 = sadd.s32 1, %s613_s10  ;;  %s38_s15 = sadd.s32 1, %s605_s8 }
   0x8   : > { %p31_p0 = scmp.ge.s32.totalorder %s29_s14, 2  ;;  %p45_p1 = scmp.ne.s32.totalorder %s605_s8, %s601_s7 }
   0x9   : > { %p46_p2 = scmp.eq.s32.totalorder %s617_s11, 0  ;;  %p51_p3 = scmp.ne.s32.totalorder %s601_s7, %s597_s6 }
   0xa   : > { %s868_s14 = smov (%p31_p0, %s29_s14), 0  ;;  %p52_p5 = scmp.eq.s32.totalorder %s397_s12, 0 }
   0xb   : > { %p675_p4 = por %p46_p2, %p45_p1  ;;  %s33_s17 = ssub.s32 %s613_s10, %s868_s14 }
   0xc   : > { %p77_p6 = scmp.eq.s32.totalorder %s397_s12, 1  ;;  %p36_p7 = scmp.eq.s32.totalorder %s33_s17, 0 }
   0xd   : > { %p681_p8 = por %p52_p5, %p51_p3  ;;  %p83_p10 = scmp.eq.s32.totalorder %s398_s13, 1 }
   0xe   : > { %p685_p9 = por %p77_p6, %p45_p1  ;;  %p400_p12 = scmp.ge.s32.totalorder %s617_s11, 2 }
   0xf   : > { %s690_s20 = scalar_select %p36_p7, %s605_s8, %s38_s15  }
  0x10   : > { %p692_p11 = por %p83_p10, %p51_p3  ;;  %p450_p13 = scmp.lt.s32.totalorder %s617_s11, 2 }
  0x11   : > { %s103_s22 = sand.u32 1, %s605_s8   ;;  %s436_s24 = sshll.u32 %s613_s10, 8 }
  0x12   : > { %s401_s23 = sshll.u32 %s103_s22, 8  ;;  %s115_s27 = scalar_lea.hbm %s856_s0, %s436_s24 }
  0x13   : > { %s107_s28 = scalar_lea.vmem [#allocation2], %s401_s23  ;;  %s116_s30 = sshll.u32 %s115_s27, 4  ;;  %s117_s30 = int_to_ptr.hbm [resolvable:$true] %s116_s30 }
  0x14   : > { %s118_s29 = sshll.u32 %s107_s28, 4  ;;  %p443_p0 = pnand %p450_p13, %p675_p4  ;;  %s119_s29 = int_to_ptr.vmem [resolvable:$true] %s118_s29 }
  0x15   : > { %p404_p1 = scmp.ge.s32.totalorder %s617_s11, 1  ;;  %s104_s2 = scalar_lea.sflag [#allocation3], %s103_s22 }
  0x16   : > { %s619_s3 = smov 128   ;;  %s620_s4 = smov 8  }
  0x17   : > { %445 = dma.hbm_to_vmem [thread:$0]  (!%p443_p0), %s117_s30, 4096, %s119_s29, %s104_s2, %s619_s3, %s619_s3, %s620_s4  }
  0x18   : > { %p126_p2 = scmp.lt.s32.totalorder %s617_s11, 3 }
  0x1a   : > { %p127_p3 = pnand %p404_p1, %p126_p2 }
  0x1b   : > { %s708_s5 = sand.u32 (!%p127_p3), 1, %s601_s7  }
  0x1c   : > { %130 = sbr.rel (%p127_p3) target bundleno = 195 (0xc3), region = 24  ;;  %s405_s12 = sshll.u32 (!%p127_p3), %s708_s5, 8 }
  0x1d   : > { %s133_s13 = scalar_lea.sflag (!%p127_p3), [#allocation3], %s708_s5  ;;  %s712_s15 = scalar_lea.vmem (!%p127_p3), [#allocation2], %s405_s12 }
  0x21   : > { %588 = dma.done.wait (%p681_p8), %s133_s13, 4096  }
  0x22   : > { %590 = vsyncadd (%p681_p8), %s133_s13, 4294963200  ;;  %v407_v0 = vld [vmem:[%s712_s15 + $0x80] sm:$0xff]  ;;  %v409_v1 = vld [vmem:[%s712_s15 + $0x90] sm:$0xff]  ;;  %s621_s16 = smov 16   ;;  %s406_s17 = sshll.u32 %s708_s5, 7  ;;  %vm207_vm0 = vcmask 130048  }
  0x23   : > { %183 = vrot.lane.b32.xlu0 %v407_v0, %s621_s16  ;;  %187 = vrot.lane.b32.xlu1 %v409_v1, %s621_s16  ;;  %v411_v2 = vld [vmem:[%s712_s15 + $0xa0] sm:$0xff]  ;;  %v408_v3 = vld [vmem:[%s712_s15 + $0x88] sm:$0xff]  ;;  %vm216_vm1 = vcmask 261120   ;;  %s753_s18 = scalar_lea.vmem [#allocation5], %s406_s17  ;;  %s437_s22 = sshll.u32 %s609_s9, 7 }
  0x24   : > { %191 = vrot.lane.b32.xlu2 %v411_v2, %s621_s16  ;;  %v410_v4 = vld [vmem:[%s712_s15 + $0x98] sm:$0xff]  ;;  %v412_v5 = vld [vmem:[%s712_s15 + $0xa8] sm:$0xff]  ;;  %v413_v6 = vld [vmem:[%s712_s15 + $0xb0] sm:$0xff]  ;;  %s306_s25 = scalar_lea.hbm %s857_s1, %s437_s22  ;;  %s307_s26 = sshll.u32 %s753_s18, 4  ;;  %s308_s26 = int_to_ptr.vmem [resolvable:$true] %s307_s26 }
  0x25   : > { %v414_v7 = vld [vmem:[%s712_s15 + $0xb8] sm:$0xff]  ;;  %v423_v8 = vld [vmem:[%s712_s15 + $0xc0] sm:$0xff]  ;;  %v424_v9 = vld [vmem:[%s712_s15 + $0xc8] sm:$0xff]  ;;  %s309_s27 = sshll.u32 %s306_s25, 4  ;;  %s292_s9 = scalar_lea.sflag [#allocation4], %s708_s5  ;;  %s310_s27 = int_to_ptr.hbm [resolvable:$true] %s309_s27 }
  0x26   : > { %v425_v10 = vld [vmem:[%s712_s15 + $0xd0] sm:$0xff]  ;;  %v426_v11 = vld [vmem:[%s712_s15 + $0xd8] sm:$0xff]  ;;  %v427_v12 = vld [vmem:[%s712_s15 + $0xe0] sm:$0xff]  ;;  %s549_s28 = sshra.s32 %s310_s27, 4  ;;  %s555_s3 = scalar_lea.hbm %s857_s1, 256  ;;  %s550_s28 = int_to_ptr.hbm [resolvable:$true] %s549_s28 }
  0x27   : > { %v428_v13 = vld [vmem:[%s712_s15 + $0xe8] sm:$0xff]  ;;  %v429_v14 = vld [vmem:[%s712_s15 + $0xf0] sm:$0xff]  ;;  %v430_v15 = vld [vmem:[%s712_s15 + $0xf8] sm:$0xff]  ;;  %s551_s29 = scalar_lea.hbm %s550_s28, 128  ;;  %p556_p7 = scmp.lt.s32.totalorder %s550_s28, %s857_s1 }
  0x28   : > { %v162_v16 = vld [vmem:[%s712_s15 + $0x20] sm:$0xff]  ;;  %v163_v19 = vld [vmem:[%s712_s15 + $0x28] sm:$0xff]  ;;  %v160_v26 = vld [vmem:[%s712_s15 + $0x10] sm:$0xff]  ;;  %p552_p4 = scmp.ne.s32.totalorder %s550_s28, %s551_s29  ;;  %p557_p8 = scmp.lt.s32.totalorder %s555_s3, %s551_s29 }
  0x29   : > { %v415_v22 = vld [vmem:[%s712_s15 + $0x40] sm:$0xff]  ;;  %v418_v29 = vld [vmem:[%s712_s15 + $0x58] sm:$0xff]  ;;  %v159_v34 = vld [vmem:[%s712_s15 + $0x8] sm:$0xff] }
  0x2a   : > { %v158_v25 = vld [vmem:[%s712_s15] sm:$0xff]  ;;  %v161_v35 = vld [vmem:[%s712_s15 + $0x18] sm:$0xff]  ;;  %v421_v38 = vld [vmem:[%s712_s15 + $0x70] sm:$0xff]  ;;  %p553_p5 = pnand %p552_p4, %p685_p9  ;;  %p558_p10 = por %p557_p8, %p556_p7 }
  0x2b   : > { %185 = vrot.lane.b32.xlu0 %v408_v3, %s621_s16  ;;  %189 = vrot.lane.b32.xlu1 %v410_v4, %s621_s16  ;;  %v164_v43 = vld [vmem:[%s712_s15 + $0x30] sm:$0xff]  ;;  %v165_v44 = vld [vmem:[%s712_s15 + $0x38] sm:$0xff] }
  0x2c   : > { %193 = vrot.lane.b32.xlu2 %v412_v5, %s621_s16  ;;  %v416_v49 = vld [vmem:[%s712_s15 + $0x48] sm:$0xff]  ;;  %v417_v50 = vld [vmem:[%s712_s15 + $0x50] sm:$0xff]  ;;  %v419_v55 = vld [vmem:[%s712_s15 + $0x60] sm:$0xff]  ;;  %p554_p6 = pneg %p553_p5 }
  0x2d   : > { %v420_v56 = vld [vmem:[%s712_s15 + $0x68] sm:$0xff]  ;;  %v422_v61 = vld [vmem:[%s712_s15 + $0x78] sm:$0xff] }
  0x2e   : > { %p559_p13 = pnand %p558_p10, %p554_p6 }
  0x33   : > { %195 = vrot.lane.b32.xlu0 %v413_v6, %s621_s16  ;;  %197 = vrot.lane.b32.xlu1 %v414_v7, %s621_s16 }
  0x34   : > { %251 = vrot.lane.b32.xlu2 %v423_v8, %s621_s16 }
  0x3b   : > { %253 = vrot.lane.b32.xlu0 %v424_v9, %s621_s16  ;;  %255 = vrot.lane.b32.xlu1 %v425_v10, %s621_s16 }
  0x3c   : > { %257 = vrot.lane.b32.xlu2 %v426_v11, %s621_s16 }
  0x43   : > { %259 = vrot.lane.b32.xlu0 %v427_v12, %s621_s16  ;;  %261 = vrot.lane.b32.xlu1 %v428_v13, %s621_s16 }
  0x44   : > { %263 = vrot.lane.b32.xlu2 %v429_v14, %s621_s16 }
  0x4b   : > { %265 = vrot.lane.b32.xlu0 %v430_v15, %s621_s16 }
  0x7e   : > { %v192_v17 = vpop.permute.xlu2 %191 }
  0x7f   : > { %v212_v18 = vsel %vm207_vm0, %v162_v16, %v192_v17 }
  0x80   : > { %221 = vst.msk [vmem:[%s753_s18 + $0x40] sm:$0xff] %vm216_vm1, %v212_v18 }
  0x86   : > { %v194_v20 = vpop.permute.xlu2 %193 }
  0x87   : > { %v213_v21 = vsel %vm207_vm0, %v163_v19, %v194_v20 }
  0x88   : > { %222 = vst.msk [vmem:[%s753_s18 + $0x48] sm:$0xff] %vm216_vm1, %v213_v21 }
  0x8e   : > { %v252_v23 = vpop.permute.xlu2 %251 }
  0x8f   : > { %v275_v24 = vsel %vm207_vm0, %v415_v22, %v252_v23 }
  0x90   : > { %283 = vst.msk [vmem:[%s753_s18 + $0x10] sm:$0xff] %vm216_vm1, %v275_v24 }
  0x95   : > { %v184_v27 = vpop.permute.xlu0 %183  ;;  %v188_v28 = vpop.permute.xlu1 %187 }
  0x96   : > { %v208_v30 = vsel %vm207_vm0, %v158_v25, %v184_v27  ;;  %v210_v31 = vsel %vm207_vm0, %v160_v26, %v188_v28  ;;  %v258_v32 = vpop.permute.xlu2 %257 }
  0x97   : > { %217 = vst.msk [vmem:[%s753_s18] sm:$0xff] %vm216_vm1, %v208_v30  ;;  %v278_v33 = vsel %vm207_vm0, %v418_v29, %v258_v32 }
  0x98   : > { %219 = vst.msk [vmem:[%s753_s18 + $0x20] sm:$0xff] %vm216_vm1, %v210_v31 }
  0x99   : > { %286 = vst.msk [vmem:[%s753_s18 + $0x38] sm:$0xff] %vm216_vm1, %v278_v33 }
  0x9d   : > { %v186_v36 = vpop.permute.xlu0 %185  ;;  %v190_v37 = vpop.permute.xlu1 %189 }
  0x9e   : > { %v209_v39 = vsel %vm207_vm0, %v159_v34, %v186_v36  ;;  %v211_v40 = vsel %vm207_vm0, %v161_v35, %v190_v37  ;;  %v264_v41 = vpop.permute.xlu2 %263 }
  0x9f   : > { %218 = vst.msk [vmem:[%s753_s18 + $0x8] sm:$0xff] %vm216_vm1, %v209_v39  ;;  %v281_v42 = vsel %vm207_vm0, %v421_v38, %v264_v41 }
  0xa0   : > { %220 = vst.msk [vmem:[%s753_s18 + $0x28] sm:$0xff] %vm216_vm1, %v211_v40 }
  0xa1   : > { %289 = vst.msk [vmem:[%s753_s18 + $0x70] sm:$0xff] %vm216_vm1, %v281_v42 }
  0xa5   : > { %v196_v45 = vpop.permute.xlu0 %195  ;;  %v198_v46 = vpop.permute.xlu1 %197 }
  0xa6   : > { %v214_v47 = vsel %vm207_vm0, %v164_v43, %v196_v45  ;;  %v215_v48 = vsel %vm207_vm0, %v165_v44, %v198_v46 }
  0xa7   : > { %223 = vst.msk [vmem:[%s753_s18 + $0x60] sm:$0xff] %vm216_vm1, %v214_v47 }
  0xa8   : > { %224 = vst.msk [vmem:[%s753_s18 + $0x68] sm:$0xff] %vm216_vm1, %v215_v48 }
  0xad   : > { %v254_v51 = vpop.permute.xlu0 %253  ;;  %v256_v52 = vpop.permute.xlu1 %255 }
  0xae   : > { %v276_v53 = vsel %vm207_vm0, %v416_v49, %v254_v51  ;;  %v277_v54 = vsel %vm207_vm0, %v417_v50, %v256_v52 }
  0xaf   : > { %284 = vst.msk [vmem:[%s753_s18 + $0x18] sm:$0xff] %vm216_vm1, %v276_v53 }
  0xb0   : > { %285 = vst.msk [vmem:[%s753_s18 + $0x30] sm:$0xff] %vm216_vm1, %v277_v54 }
  0xb5   : > { %v260_v57 = vpop.permute.xlu0 %259  ;;  %v262_v58 = vpop.permute.xlu1 %261 }
  0xb6   : > { %v279_v59 = vsel %vm207_vm0, %v419_v55, %v260_v57  ;;  %v280_v60 = vsel %vm207_vm0, %v420_v56, %v262_v58 }
  0xb7   : > { %287 = vst.msk [vmem:[%s753_s18 + $0x50] sm:$0xff] %vm216_vm1, %v279_v59 }
  0xb8   : > { %288 = vst.msk [vmem:[%s753_s18 + $0x58] sm:$0xff] %vm216_vm1, %v280_v60 }
  0xbd   : > { %v266_v62 = vpop.permute.xlu0 %265 }
  0xbe   : > { %v282_v63 = vsel %vm207_vm0, %v422_v61, %v266_v62 }
  0xbf   : > { %290 = vst.msk [vmem:[%s753_s18 + $0x78] sm:$0xff] %vm216_vm1, %v282_v63 }
  0xc0   : > { %562 = shalt.err (!%p559_p13)
}
  0xc1   : > { %s622_s5 = smov 128   ;;  %s623_s13 = smov 8  }
  0xc2   : > { %440 = dma.vmem_to_hbm [thread:$0]  (%p685_p9), %s308_s26, 2048, %s310_s27, %s292_s9, %s622_s5, %s622_s5, %s623_s13  }
  0xc3 PF: > { %s324_s15 = sand.u32 1, %s597_s6   ;;  %p447_p0 = pnand %p400_p12, %p692_p11 }
  0xc4   : > { %s325_s16 = scalar_lea.sflag [#allocation4], %s324_s15 }
  0xc5   : > { %p448_p1 = pneg %p447_p0 }
  0xc7   : > { %592 = dma.done.wait (%p448_p1), %s325_s16, 2048  }
  0xc8   : > { %594 = vsyncadd (%p448_p1), %s325_s16, 4294965248  ;;  %s17_s11 = sadd.s32 1, %s617_s11   ;;  %s862_s6 = smov %s601_s7 }
  0xc9   : > { %p14_p2 = scmp.ge.s32.totalorder %s17_s11, 4   ;;  %s863_s7 = smov %s605_s8 }
  0xca   : > { %s864_s8 = smov %s690_s20  ;;  %s865_s9 = smov %s613_s10 }
  0xcb   : > { %s866_s10 = smov %s868_s14  ;;  %16 = sbr.rel (!%p14_p2) target bundleno = 6 (0x6), region = 72 }
  0xd0   :  { %331 = vsyncpa [#allocation3], 1 }
  0xd1   :  { %333 = vsyncpa [#allocation3 + $0x1], 1 }
  0xd2   :  { %334 = vsyncpa [#allocation4], 1 }
  0xd3   :  { %336 = vsyncpa [#allocation4 + $0x1], 1 }

</bundles_post_ra>
